<compile_context>
chip_gen: v6e
topology: v6e:2x2x1
jax: 0.10.0
libtpu: 0.0.40
codegen_flags: <defaults>
</compile_context>

<pallas_src>
import functools
import math

import jax
import jax.numpy as jnp
from jax.experimental import pallas as pl
from jax.experimental.pallas import tpu as pltpu

LN_EPS = 1e-12
NEG_INF = -1e9          # additive attention mask value
NEG_BIG = -1e30         # finite "-inf" for online logsumexp init / vocab padding
IGNORE_INDEX = -100


# ---------------------------------------------------------------------------
# In-kernel helpers (operate on traced values)
# ---------------------------------------------------------------------------

def _mm(a, b):
    """MXU matmul: bf16 operands, f32 accumulation (casts are no-ops if already bf16)."""
    return jnp.dot(a.astype(jnp.bfloat16), b.astype(jnp.bfloat16),
                   preferred_element_type=jnp.float32)


def _mm_t(a, b):
    """a @ b.T (contract last dims) without materializing a transpose."""
    return jax.lax.dot_general(a.astype(jnp.bfloat16), b.astype(jnp.bfloat16),
                               (((1,), (1,)), ((), ())),
                               preferred_element_type=jnp.float32)


def _gelu(x):
    # TODO(synk): HF BERT default is exact erf-GELU; tanh approximation used here
    # (erf has no guaranteed Mosaic lowering).
    c = jnp.float32(math.sqrt(2.0 / math.pi))
    return 0.5 * x * (1.0 + jnp.tanh(c * (x + 0.044715 * x * x * x)))


def _ln(x, g, b):
    mu = jnp.mean(x, axis=-1, keepdims=True)
    xc = x - mu
    var = jnp.mean(xc * xc, axis=-1, keepdims=True)
    return xc * jax.lax.rsqrt(var + LN_EPS) * g + b


@functools.lru_cache(maxsize=1)
def _vmem_limit_bytes():
    # v7x: 64 MiB VMEM/TC -> ~32 MiB scoped; v5e/v6e: 128 MiB -> ~64 MiB scoped.
    try:
        cap = pltpu.get_tpu_info().vmem_capacity_bytes
        return int(min(cap // 2, 96 * 1024 * 1024))
    except Exception:
        return 32 * 1024 * 1024


# ---------------------------------------------------------------------------
# Kernels
# ---------------------------------------------------------------------------

def _embed_ln_kernel(we_ref, pe_ref, te_ref, g_ref, b_ref, o_ref):
    x = we_ref[0] + pe_ref[0] + te_ref[0]            # (S, H) f32
    o_ref[0] = _ln(x, g_ref[...], b_ref[...])


def _encoder_layer_kernel(x_ref, mask_ref,
                          qkv_w_ref, qkv_b_ref,      # (H, 3H) bf16, (1, 3H) f32
                          ao_w_ref, ao_b_ref,        # (H, H) bf16, (1, H) f32
                          aln_g_ref, aln_b_ref,      # (1, H)
                          iw_ref, ib_ref,            # (H, I) bf16, (1, I)
                          ow_ref, ob_ref,            # (I, H) bf16, (1, H)
                          olng_ref, olnb_ref,        # (1, H)
                          out_ref, *, heads, head_dim):
    # TODO(synk): for very long sequences add flash-style key tiling (online
    # softmax) inside this per-example block; at BERT sizes (S<=512) the SxS
    # per-head score block fits comfortably in VMEM.
    H = heads * head_dim
    x = x_ref[0]                                     # (S, H) f32 residual stream
    xb = x.astype(jnp.bfloat16)                      # cast once, reused for Q/K/V

    # Additive mask rebuilt in-kernel from the raw (1, S) attention mask row.
    madd = jnp.where(mask_ref[0] != 0, 0.0, NEG_INF).astype(jnp.float32)   # (1, S)

    # ----- fused QKV projection: one full-width MXU matmul ------------------
    qkv = _mm(xb, qkv_w_ref[...]) + qkv_b_ref[...]   # (S, 3H) f32
    qkvb = qkv.astype(jnp.bfloat16)                  # cast once for all heads
    scale = jnp.float32(1.0 / math.sqrt(head_dim))

    # ----- per-head attention (unrolled); everything stays on-chip ----------
    ctxs = []
    for h in range(heads):
        lo = h * head_dim
        qh = qkvb[:, lo:lo + head_dim]
        kh = qkvb[:, H + lo:H + lo + head_dim]
        vh = qkvb[:, 2 * H + lo:2 * H + lo + head_dim]
        s = _mm_t(qh, kh) * scale + madd                              # (S, S) f32
        s = s - jnp.max(s, axis=-1, keepdims=True)
        e = jnp.exp(s)
        p = e * pl.reciprocal(jnp.sum(e, axis=-1, keepdims=True), approx=True)
        ctxs.append(_mm(p.astype(jnp.bfloat16), vh))                  # (S, Dh) f32
    ctx = jnp.concatenate(ctxs, axis=-1).astype(jnp.bfloat16)         # (S, H)

    # ----- fused output projection + residual + LayerNorm -------------------
    attn = _mm(ctx, ao_w_ref[...]) + ao_b_ref[...]
    x1 = _ln(attn + x, aln_g_ref[...], aln_b_ref[...])

    # ----- FFN: dense + GELU, dense, residual + LayerNorm --------------------
    x1b = x1.astype(jnp.bfloat16)
    inter = _gelu(_mm(x1b, iw_ref[...]) + ib_ref[...])
    y = _mm(inter.astype(jnp.bfloat16), ow_ref[...]) + ob_ref[...] + x1
    out_ref[0] = _ln(y, olng_ref[...], olnb_ref[...])


def _pooled_cls_loss_kernel(cls_ref, pw_ref, pb_ref, cw_ref, cb_ref, lbl_ref,
                            loss_ref):
    pooled = jnp.tanh(_mm(cls_ref[...], pw_ref[...]) + pb_ref[...])   # BertPooler
    logits = _mm(pooled, cw_ref[...]) + cb_ref[...]                   # (B, 2) f32
    lbl = lbl_ref[...]                                                # (B, 1) int32
    m = jnp.max(logits, axis=-1, keepdims=True)
    lse = jnp.log(jnp.sum(jnp.exp(logits - m), axis=-1, keepdims=True)) + m
    col = jax.lax.broadcasted_iota(jnp.int32, logits.shape, 1)
    tl = jnp.sum(jnp.where(col == lbl, logits, 0.0), axis=-1, keepdims=True)
    valid = (lbl != IGNORE_INDEX).astype(jnp.float32)
    loss_ref[...] = (jnp.sum((lse - tl) * valid, keepdims=True)
                     / jnp.sum(valid, keepdims=True))


def _mlm_loss_kernel(h_ref, mw_ref, mb_ref, g_ref, b_ref, we_ref, db_ref, lbl_ref,
                     num_ref, den_ref,
                     t_sc, m_sc, l_sc, tl_sc, *, vocab_tile):
    i = pl.program_id(0)
    j = pl.program_id(1)
    nv = pl.num_programs(1)

    @pl.when((i == 0) & (j == 0))
    def _():
        num_ref[...] = jnp.zeros_like(num_ref)
        den_ref[...] = jnp.zeros_like(den_ref)

    @pl.when(j == 0)
    def _():
        # MLM transform (dense + GELU + LayerNorm), cached across vocab tiles.
        t = _gelu(_mm(h_ref[...], mw_ref[...]) + mb_ref[...])
        t_sc[...] = _ln(t, g_ref[...], b_ref[...]).astype(jnp.bfloat16)
        m_sc[...] = jnp.full_like(m_sc, NEG_BIG)
        l_sc[...] = jnp.zeros_like(l_sc)
        tl_sc[...] = jnp.zeros_like(tl_sc)

    # Tied decoder against this vocab tile of the bf16 embedding table.
    logits = _mm_t(t_sc[...], we_ref[...]) + db_ref[...]              # (tr, tv) f32
    lbl = lbl_ref[...]                                                # (tr, 1) int32
    col = jax.lax.broadcasted_iota(jnp.int32, logits.shape, 1) + j * vocab_tile
    tl_sc[...] += jnp.sum(jnp.where(col == lbl, logits, 0.0), axis=-1, keepdims=True)

    # Online logsumexp over vocab tiles.
    m_new = jnp.maximum(m_sc[...], jnp.max(logits, axis=-1, keepdims=True))
    l_sc[...] = (l_sc[...] * jnp.exp(m_sc[...] - m_new)
                 + jnp.sum(jnp.exp(logits - m_new), axis=-1, keepdims=True))
    m_sc[...] = m_new

    @pl.when(j == nv - 1)
    def _():
        lse = m_sc[...] + jnp.log(l_sc[...])
        valid = (lbl != IGNORE_INDEX).astype(jnp.float32)
        num_ref[...] += jnp.sum((lse - tl_sc[...]) * valid, keepdims=True)
        den_ref[...] += jnp.sum(valid, keepdims=True)


# ---------------------------------------------------------------------------
# Wrappers
# ---------------------------------------------------------------------------

def embed_layernorm(word_e, pos_e, type_e, gamma, beta):
    B, S, H = word_e.shape
    tok_spec = pl.BlockSpec((1, S, H), lambda b: (b, 0, 0))
    vec_spec = pl.BlockSpec((1, H), lambda b: (0, 0))
    return pl.pallas_call(
        _embed_ln_kernel,
        grid=(B,),
        in_specs=[tok_spec, tok_spec, tok_spec, vec_spec, vec_spec],
        out_specs=tok_spec,
        out_shape=jax.ShapeDtypeStruct((B, S, H), jnp.float32),
        compiler_params=pltpu.CompilerParams(dimension_semantics=("parallel",)),
    )(word_e, pos_e, type_e, gamma.reshape(1, H), beta.reshape(1, H))


def encoder_layer(x, attn_mask, lp, *, heads):
    """One fused BERT encoder layer on a (B,) grid (one example per grid step)."""
    B, S, H = x.shape
    dh = H // heads
    inter = lp["i_w"].shape[1]

    # Fuse QKV into one (H, 3H) matmul weight; pre-cast all matmul weights to
    # bf16 (the MXU consumes bf16 anyway) -> half the weight HBM/VMEM bytes.
    qkv_w = jnp.concatenate([lp["q_w"], lp["k_w"], lp["v_w"]], axis=1).astype(jnp.bfloat16)
    qkv_b = jnp.concatenate([lp["q_b"], lp["k_b"], lp["v_b"]]).reshape(1, 3 * H)

    args = (x, attn_mask,
            qkv_w, qkv_b,
            lp["ao_w"].astype(jnp.bfloat16), lp["ao_b"].reshape(1, H),
            lp["a_ln_g"].reshape(1, H), lp["a_ln_b"].reshape(1, H),
            lp["i_w"].astype(jnp.bfloat16), lp["i_b"].reshape(1, inter),
            lp["o_w"].astype(jnp.bfloat16), lp["o_b"].reshape(1, H),
            lp["o_ln_g"].reshape(1, H), lp["o_ln_b"].reshape(1, H))

    tok_spec = pl.BlockSpec((1, S, H), lambda b: (b, 0, 0))
    mask_spec = pl.BlockSpec((1, 1, S), lambda b: (b, 0, 0))

    def _full(a):
        # Constant block index -> weights are DMA'd once and stay VMEM-resident
        # across the whole batch grid.
        return pl.BlockSpec(a.shape, lambda b: (0,) * a.ndim)

    in_specs = [tok_spec, mask_spec] + [_full(a) for a in args[2:]]

    # TODO(synk): residual stream kept f32 between layers for fidelity; bf16 at
    # the layer boundary would halve the inter-kernel HBM traffic.
    return pl.pallas_call(
        functools.partial(_encoder_layer_kernel, heads=heads, head_dim=dh),
        grid=(B,),
        in_specs=in_specs,
        out_specs=tok_spec,
        out_shape=jax.ShapeDtypeStruct((B, S, H), jnp.float32),
        compiler_params=pltpu.CompilerParams(
            dimension_semantics=("parallel",),
            vmem_limit_bytes=_vmem_limit_bytes()),
    )(*args)


def pooled_cls_loss(cls_tok, pool_w, pool_b, cls_w, cls_b, labels):
    """BertPooler + binary classifier + mean CE, fused (logits never hit HBM)."""
    B, H = cls_tok.shape
    C = cls_w.shape[1]
    out = pl.pallas_call(
        _pooled_cls_loss_kernel,
        out_shape=jax.ShapeDtypeStruct((1, 1), jnp.float32),
    )(cls_tok, pool_w.astype(jnp.bfloat16), pool_b.reshape(1, H),
      cls_w.astype(jnp.bfloat16), cls_b.reshape(1, C),
      labels.reshape(B, 1).astype(jnp.int32))
    return out[0, 0]


def _pick_row_tile(n, max_tile=256):
    best = None
    t = 8
    while t <= min(n, max_tile):
        if n % t == 0:
            best = t
        t += 8
    return best if best is not None else n


def mlm_loss(hidden, mlm_w, mlm_b, mlm_g, mlm_beta, word_emb, dec_b, labels):
    """MLM transform + tied decoder + CE on a (row tiles x vocab tiles) grid."""
    N, H = hidden.shape
    V = word_emb.shape[0]
    tr = _pick_row_tile(N)
    tv = 128 if V <= 512 else 512

    # Pad the vocab to a clean tile multiple; padded columns get a -1e30 bias so
    # they contribute ~0 to the logsumexp and can never match a label.
    v_pad = ((V + tv - 1) // tv) * tv
    we = word_emb.astype(jnp.bfloat16)
    db = dec_b
    if v_pad != V:
        we = jnp.pad(we, ((0, v_pad - V), (0, 0)))
        db = jnp.pad(db, (0, v_pad - V), constant_values=NEG_BIG)
    nr, nv = N // tr, v_pad // tv

    mlm_b2 = mlm_b.reshape(1, H)
    mlm_g2 = mlm_g.reshape(1, H)
    mlm_beta2 = mlm_beta.reshape(1, H)
    db2 = db.reshape(1, v_pad)
    mlm_w_b = mlm_w.astype(jnp.bfloat16)

    def _full(a):
        return pl.BlockSpec(a.shape, lambda i, j: (0,) * a.ndim)

    num, den = pl.pallas_call(
        functools.partial(_mlm_loss_kernel, vocab_tile=tv),
        grid=(nr, nv),
        in_specs=[
            pl.BlockSpec((tr, H), lambda i, j: (i, 0)),     # hidden rows
            _full(mlm_w_b), _full(mlm_b2), _full(mlm_g2), _full(mlm_beta2),
            pl.BlockSpec((tv, H), lambda i, j: (j, 0)),     # word_emb vocab tile
            pl.BlockSpec((1, tv), lambda i, j: (0, j)),     # decoder bias tile
            pl.BlockSpec((tr, 1), lambda i, j: (i, 0)),     # labels rows
        ],
        out_specs=[pl.BlockSpec((1, 1), lambda i, j: (0, 0)),
                   pl.BlockSpec((1, 1), lambda i, j: (0, 0))],
        out_shape=[jax.ShapeDtypeStruct((1, 1), jnp.float32),
                   jax.ShapeDtypeStruct((1, 1), jnp.float32)],
        scratch_shapes=[pltpu.VMEM((tr, H), jnp.bfloat16),   # cached transform
                        pltpu.VMEM((tr, 1), jnp.float32),    # running max
                        pltpu.VMEM((tr, 1), jnp.float32),    # running sum-exp
                        pltpu.VMEM((tr, 1), jnp.float32)],   # true-logit acc
        compiler_params=pltpu.CompilerParams(
            dimension_semantics=("arbitrary", "arbitrary"),
            vmem_limit_bytes=_vmem_limit_bytes()),
    )(hidden, mlm_w_b, mlm_b2, mlm_g2, mlm_beta2, we, db2,
      labels.reshape(N, 1).astype(jnp.int32))
    return (num / den)[0, 0]


# ---------------------------------------------------------------------------
# Model definition (synthetic small BERT replacing the pretrained checkpoint)
# ---------------------------------------------------------------------------

CFG = dict(vocab=250, hidden=32, layers=2, heads=2, inter=64, max_pos=16, type_vocab=2)


def init_params(key, cfg):
    def nrm(k, shape):
        return 0.02 * jax.random.normal(k, shape, dtype=jnp.float32)

    keys = iter(jax.random.split(key, 64))
    H, I, V, P, T = cfg["hidden"], cfg["inter"], cfg["vocab"], cfg["max_pos"], cfg["type_vocab"]
    params = dict(
        word_emb=nrm(next(keys), (V, H)),
        pos_emb=nrm(next(keys), (P, H)),
        type_emb=nrm(next(keys), (T, H)),
        emb_ln_g=jnp.ones((H,), jnp.float32), emb_ln_b=jnp.zeros((H,), jnp.float32),
        pool_w=nrm(next(keys), (H, H)), pool_b=jnp.zeros((H,), jnp.float32),
        qi_w=nrm(next(keys), (H, 2)), qi_b=jnp.zeros((2,), jnp.float32),
        hi_w=nrm(next(keys), (H, 2)), hi_b=jnp.zeros((2,), jnp.float32),
        mlm_w=nrm(next(keys), (H, H)), mlm_b=jnp.zeros((H,), jnp.float32),
        mlm_ln_g=jnp.ones((H,), jnp.float32), mlm_ln_b=jnp.zeros((H,), jnp.float32),
        dec_b=jnp.zeros((V,), jnp.float32),
        layers=[],
    )
    for _ in range(cfg["layers"]):
        params["layers"].append(dict(
            q_w=nrm(next(keys), (H, H)), q_b=jnp.zeros((H,), jnp.float32),
            k_w=nrm(next(keys), (H, H)), k_b=jnp.zeros((H,), jnp.float32),
            v_w=nrm(next(keys), (H, H)), v_b=jnp.zeros((H,), jnp.float32),
            ao_w=nrm(next(keys), (H, H)), ao_b=jnp.zeros((H,), jnp.float32),
            a_ln_g=jnp.ones((H,), jnp.float32), a_ln_b=jnp.zeros((H,), jnp.float32),
            i_w=nrm(next(keys), (H, I)), i_b=jnp.zeros((I,), jnp.float32),
            o_w=nrm(next(keys), (I, H)), o_b=jnp.zeros((H,), jnp.float32),
            o_ln_g=jnp.ones((H,), jnp.float32), o_ln_b=jnp.zeros((H,), jnp.float32),
        ))
    return params


def bert_encoder(params, input_ids, token_type_ids, attention_mask, cfg):
    B, S = input_ids.shape
    H, NH = cfg["hidden"], cfg["heads"]
    # Embedding gathers stay in plain JAX; sum + LayerNorm is one fused kernel.
    word_e = params["word_emb"][input_ids]                             # (B,S,H)
    pos_e = jnp.broadcast_to(params["pos_emb"][:S][None], (B, S, H))
    type_e = params["type_emb"][token_type_ids]
    x = embed_layernorm(word_e, pos_e, type_e,
                        params["emb_ln_g"], params["emb_ln_b"])
    # TODO(synk): dropout layers skipped (eval-mode / deterministic semantics).

    mask3 = attention_mask.reshape(B, 1, S).astype(jnp.int32)          # raw mask only
    for lp in params["layers"]:
        x = encoder_layer(x, mask3, lp, heads=NH)
    return x                                                           # (B, S, H)


def mpftod_bert_forward(params, batch, cfg, grad_accum_steps=1):
    """Mirrors MPFToD_Bert.forward: returns (task_id, loss)."""
    task_id, inp, labels = batch
    B, S = inp["input_ids"].shape
    H = cfg["hidden"]
    hidden = bert_encoder(params, inp["input_ids"], inp["token_type_ids"],
                          inp["attention_mask"], cfg)                  # (B, S, H)
    if task_id in (0, 1):
        cls_tok = hidden[:, 0, :]                                      # (B, H) CLS rows
        w, b = ((params["qi_w"], params["qi_b"]) if task_id == 0
                else (params["hi_w"], params["hi_b"]))
        # pooler + classifier + CE fused; .squeeze(1) in the reference is a no-op.
        loss = pooled_cls_loss(cls_tok, params["pool_w"], params["pool_b"],
                               w, b, labels.reshape(-1))
    elif task_id == 2:
        # TODO(synk): at real MLM mask rates, gather only the rows with label !=
        # -100 before this call (cuts the (N,H)@(H,V) work ~6-7x); kept full here
        # to stay shape-static.
        loss = mlm_loss(hidden.reshape(B * S, H), params["mlm_w"], params["mlm_b"],
                        params["mlm_ln_g"], params["mlm_ln_b"],
                        params["word_emb"], params["dec_b"], labels.reshape(-1))
    else:
        raise ValueError(f"unknown task_id {task_id}")
    if grad_accum_steps > 1:
        loss = loss / grad_accum_steps
    return task_id, loss


# ---------------------------------------------------------------------------
# Demo
# ---------------------------------------------------------------------------

if __name__ == "__main__":
    cfg = CFG
    key = jax.random.PRNGKey(0)
    kp, kid, klab0, klab2 = jax.random.split(key, 4)
    params = init_params(kp, cfg)

    B, S = 2, 8
    input_ids = jax.random.randint(kid, (B, S), 0, cfg["vocab"], dtype=jnp.int32)
    token_type_ids = jnp.zeros((B, S), jnp.int32)
    attention_mask = jnp.ones((B, S), jnp.int32).at[1, -2:].set(0)
    inp = dict(input_ids=input_ids, token_type_ids=token_type_ids,
               attention_mask=attention_mask)

    labels_cls = jax.random.randint(klab0, (B,), 0, 2, dtype=jnp.int32)
    labels_mlm = jax.random.randint(klab2, (B, S), 0, cfg["vocab"], dtype=jnp.int32)
    labels_mlm = labels_mlm.at[:, ::2].set(-100)        # MLM-style ignored positions

    for task_id, labels in ((0, labels_cls), (1, labels_cls), (2, labels_mlm)):
        tid, loss = mpftod_bert_forward(params, (task_id, inp, labels), cfg,
                                        grad_accum_steps=1)
        jax.block_until_ready(loss)
    print("KERNEL_OK")
</pallas_src>

<mosaic_0001>
module attributes {stable_mosaic.version = 11 : i64} {
  func.func @_embed_ln_kernel(%arg0: i32, %arg1: memref<1x8x32xf32, #tpu.memory_space<vmem>>, %arg2: memref<1x8x32xf32, #tpu.memory_space<vmem>>, %arg3: memref<1x8x32xf32, #tpu.memory_space<vmem>>, %arg4: memref<1x32xf32, #tpu.memory_space<vmem>>, %arg5: memref<1x32xf32, #tpu.memory_space<vmem>>, %arg6: memref<1x8x32xf32, #tpu.memory_space<vmem>>) attributes {dimension_semantics = [#tpu.dimension_semantics<parallel>], iteration_bounds = array<i64: 2>, scalar_prefetch = 0 : i64, scratch_operands = 0 : i64, tpu.core_type = #tpu.core_type<tc>, window_params = [{transform_indices = @transform_0, window_bounds = array<i64: 1, 8, 32>}, {transform_indices = @transform_1, window_bounds = array<i64: 1, 8, 32>}, {transform_indices = @transform_2, window_bounds = array<i64: 1, 8, 32>}, {pipeline_mode = #tpu.pipeline_mode<synchronous>, transform_indices = @transform_3, window_bounds = array<i64: 1, 32>}, {pipeline_mode = #tpu.pipeline_mode<synchronous>, transform_indices = @transform_4, window_bounds = array<i64: 1, 32>}, {transform_indices = @transform_5, window_bounds = array<i64: 1, 8, 32>}]} {
    %c0 = arith.constant 0 : index
    %c0_0 = arith.constant 0 : index
    %c0_1 = arith.constant 0 : index
    %0 = vector.load %arg1[%c0, %c0_0, %c0_1] : memref<1x8x32xf32, #tpu.memory_space<vmem>>, vector<1x8x32xf32>
    %1 = vector.shape_cast %0 : vector<1x8x32xf32> to vector<8x32xf32>
    %c0_2 = arith.constant 0 : index
    %c0_3 = arith.constant 0 : index
    %c0_4 = arith.constant 0 : index
    %2 = vector.load %arg2[%c0_2, %c0_3, %c0_4] : memref<1x8x32xf32, #tpu.memory_space<vmem>>, vector<1x8x32xf32>
    %3 = vector.shape_cast %2 : vector<1x8x32xf32> to vector<8x32xf32>
    %4 = arith.addf %1, %3 : vector<8x32xf32>
    %c0_5 = arith.constant 0 : index
    %c0_6 = arith.constant 0 : index
    %c0_7 = arith.constant 0 : index
    %5 = vector.load %arg3[%c0_5, %c0_6, %c0_7] : memref<1x8x32xf32, #tpu.memory_space<vmem>>, vector<1x8x32xf32>
    %6 = vector.shape_cast %5 : vector<1x8x32xf32> to vector<8x32xf32>
    %7 = arith.addf %4, %6 : vector<8x32xf32>
    %c0_8 = arith.constant 0 : index
    %c0_9 = arith.constant 0 : index
    %8 = vector.load %arg4[%c0_8, %c0_9] : memref<1x32xf32, #tpu.memory_space<vmem>>, vector<1x32xf32>
    %c0_10 = arith.constant 0 : index
    %c0_11 = arith.constant 0 : index
    %9 = vector.load %arg5[%c0_10, %c0_11] : memref<1x32xf32, #tpu.memory_space<vmem>>, vector<1x32xf32>
    %cst = arith.constant dense<0.000000e+00> : vector<8xf32>
    %10 = vector.multi_reduction <add>, %7, %cst [1] : vector<8x32xf32> to vector<8xf32>
    %11 = vector.shape_cast %10 : vector<8xf32> to vector<8x1xf32>
    %cst_12 = arith.constant 3.200000e+01 : f32
    %12 = vector.broadcast %cst_12 : f32 to vector<8x1xf32>
    %13 = arith.divf %11, %12 : vector<8x1xf32>
    %14 = vector.broadcast %13 : vector<8x1xf32> to vector<8x32xf32>
    %15 = arith.subf %7, %14 : vector<8x32xf32>
    %16 = arith.mulf %15, %15 : vector<8x32xf32>
    %cst_13 = arith.constant dense<0.000000e+00> : vector<8xf32>
    %17 = vector.multi_reduction <add>, %16, %cst_13 [1] : vector<8x32xf32> to vector<8xf32>
    %18 = vector.shape_cast %17 : vector<8xf32> to vector<8x1xf32>
    %cst_14 = arith.constant 3.200000e+01 : f32
    %19 = vector.broadcast %cst_14 : f32 to vector<8x1xf32>
    %20 = arith.divf %18, %19 : vector<8x1xf32>
    %cst_15 = arith.constant 9.99999996E-13 : f32
    %21 = vector.broadcast %cst_15 : f32 to vector<8x1xf32>
    %22 = arith.addf %20, %21 : vector<8x1xf32>
    %23 = math.rsqrt %22 : vector<8x1xf32>
    %24 = vector.broadcast %23 : vector<8x1xf32> to vector<8x32xf32>
    %25 = arith.mulf %15, %24 : vector<8x32xf32>
    %26 = vector.broadcast %8 : vector<1x32xf32> to vector<8x32xf32>
    %27 = arith.mulf %25, %26 : vector<8x32xf32>
    %28 = vector.broadcast %9 : vector<1x32xf32> to vector<8x32xf32>
    %29 = arith.addf %27, %28 : vector<8x32xf32>
    %c0_16 = arith.constant 0 : index
    %c0_17 = arith.constant 0 : index
    %c0_18 = arith.constant 0 : index
    %30 = vector.load %arg6[%c0_16, %c0_17, %c0_18] : memref<1x8x32xf32, #tpu.memory_space<vmem>>, vector<1x8x32xf32>
    %31 = vector.shape_cast %30 : vector<1x8x32xf32> to vector<8x32xf32>
    %32 = vector.shape_cast %29 : vector<8x32xf32> to vector<1x8x32xf32>
    tpu.vector_store %arg6[%c0_16, %c0_17, %c0_18], %32 {strides = array<i32>} : memref<1x8x32xf32, #tpu.memory_space<vmem>>, vector<1x8x32xf32>,
    return
  }
  func.func @transform_0(%arg0: i32) -> (i32, i32, i32) {
    %c0_i32 = arith.constant 0 : i32
    %c0_i32_0 = arith.constant 0 : i32
    %c0_i32_1 = arith.constant 0 : i32
    return %arg0, %c0_i32, %c0_i32_0 : i32, i32, i32
  }
  func.func @transform_1(%arg0: i32) -> (i32, i32, i32) {
    %c0_i32 = arith.constant 0 : i32
    %c0_i32_0 = arith.constant 0 : i32
    %c0_i32_1 = arith.constant 0 : i32
    return %arg0, %c0_i32, %c0_i32_0 : i32, i32, i32
  }
  func.func @transform_2(%arg0: i32) -> (i32, i32, i32) {
    %c0_i32 = arith.constant 0 : i32
    %c0_i32_0 = arith.constant 0 : i32
    %c0_i32_1 = arith.constant 0 : i32
    return %arg0, %c0_i32, %c0_i32_0 : i32, i32, i32
  }
  func.func @transform_3(%arg0: i32) -> (i32, i32) {
    %c0_i32 = arith.constant 0 : i32
    %c0_i32_0 = arith.constant 0 : i32
    %c0_i32_1 = arith.constant 0 : i32
    return %c0_i32, %c0_i32_0 : i32, i32
  }
  func.func @transform_4(%arg0: i32) -> (i32, i32) {
    %c0_i32 = arith.constant 0 : i32
    %c0_i32_0 = arith.constant 0 : i32
    %c0_i32_1 = arith.constant 0 : i32
    return %c0_i32, %c0_i32_0 : i32, i32
  }
  func.func @transform_5(%arg0: i32) -> (i32, i32, i32) {
    %c0_i32 = arith.constant 0 : i32
    %c0_i32_0 = arith.constant 0 : i32
    %c0_i32_1 = arith.constant 0 : i32
    return %arg0, %c0_i32, %c0_i32_0 : i32, i32, i32
  }
}

</mosaic_0001>

<bundles_post_ra>
// kernel: tpu_custom_call.1
= control target key start
LH: loop header
LB: loop body
LE: loop exit
PB: predicated region body
PF: predicated region fallthrough
CT: control target
= control target key end

     0   :  { %s957_s0 = inlined_call_operand.hbm [shape: f32[2,8,32], index: 0, kind: input, shape index: {}]   ;;  %s958_s1 = inlined_call_operand.hbm [shape: f32[2,8,32], index: 1, kind: input, shape index: {}]   ;;  %s959_s2 = inlined_call_operand.hbm [shape: f32[2,8,32], index: 2, kind: input, shape index: {}]   ;;  %s960_s3 = inlined_call_operand.vmem [shape: f32[1,32], index: 3, kind: input, shape index: {}]   ;;  %s961_s4 = inlined_call_operand.vmem [shape: f32[1,32], index: 4, kind: input, shape index: {}]   ;;  %s962_s5 = inlined_call_operand.hbm [shape: f32[2,8,32], index: 5, kind: output, shape index: {}]  }
   0x1   :  { %969 = sst [smem:[#allocation15_spill]] %s957_s0 }
   0x2   :  { %970 = sst [smem:[#allocation16_spill]] %s958_s1 }
   0x3   :  { %10 = vsyncpa [#allocation3], 0 }
   0x4   :  { %12 = vsyncpa [#allocation3 + $0x1], 0 }
   0x5   :  { %13 = vsyncpa [#allocation6], 0 }
   0x6   :  { %15 = vsyncpa [#allocation6 + $0x1], 0 }
   0x7   :  { %16 = vsyncpa [#allocation4], 0 }
   0x8   :  { %18 = vsyncpa [#allocation4 + $0x1], 0  ;;  %s741_s18 = smov 0   ;;  %s743_s19 = smov 0  }
   0x9   :  { %s745_s20 = smov 0   ;;  %s747_s21 = smov 0  }
   0xa LB: > { %971 = sst [smem:[#allocation12_spill]] %s701_s20  ;;  %s762_s22 = sadd.s32 4294967295, %s705_s21   ;;  %s705_s21 = sphi %s747_s21, %s989_s21   ;;  %s701_s20 = sphi %s745_s20, %s991_s20   ;;  %s697_s19 = sphi %s743_s19, %s993_s19   ;;  %s693_s18 = sphi %s741_s18, %s992_s18  }
   0xb   : > { %s475_s23 = sadd.s32 4294967294, %s705_s21   ;;  %s766_s24 = sadd.s32 1, %s705_s21  }
   0xc   : > { %972 = sst [smem:[#allocation13_spill]] %s766_s24  ;;  %s31_s25 = sadd.s32 1, %s701_s20 }
   0xd   : > { %s28_s26 = ssub.s32 %s705_s21, %s766_s24  ;;  %p38_p0 = scmp.ne.s32.totalorder %s701_s20, %s697_s19 }
   0xe   : > { %p29_p1 = scmp.eq.s32.totalorder %s28_s26, 0  ;;  %p39_p2 = scmp.eq.s32.totalorder %s705_s21, 0 }
   0xf   : > { %p44_p3 = scmp.ne.s32.totalorder %s697_s19, %s693_s18  ;;  %p45_p4 = scmp.eq.s32.totalorder %s762_s22, 0 }
  0x10   : > { %s778_s27 = scalar_select %p29_p1, %s701_s20, %s31_s25  }
  0x11   : > { %p40_p5 = por %p39_p2, %p38_p0  ;;  %p780_p6 = por %p45_p4, %p44_p3 }
  0x12   : > { %973 = sst [smem:[#allocation14_spill]] %s778_s27  ;;  %p162_p7 = scmp.eq.s32.totalorder %s762_s22, 1 }
  0x13   : > { %s974_s28 = scalar_select %p780_p6, 1, 0 }
  0x14   : > { %p168_p8 = scmp.eq.s32.totalorder %s475_s23, 1  ;;  %p517_p10 = scmp.lt.s32.totalorder %s705_s21, 2 }
  0x15   : > { %p787_p11 = por %p162_p7, %p38_p0  ;;  %s963_s6 = sand.u32 1, %s701_s20  }
  0x16   : > { %p791_p12 = por %p168_p8, %p44_p3  ;;  %s797_s7 = sshll.u32 %s705_s21, 7 }
  0x17   : > { %s975_s29 = scalar_select %p787_p11, 1, 0 }
  0x18   : > { %s976_s30 = scalar_select %p791_p12, 1, 0 }
  0x19   : > { %s801_s8 = sshll.u32 %s963_s6, 3  ;;  %p803_p13 = pnand %p517_p10, %p40_p5 }
  0x1a   : > { %s212_s10 = sand.u32 1, %s705_s21   ;;  %s978_s1 = sld [smem:[#allocation16_spill]] }
  0x1b   : > { %s216_s14 = scalar_lea.vmem [#allocation5], %s801_s8  ;;  %s816_s16 = scalar_lea.sflag [#allocation6], %s212_s10 }
  0x1c   : > { %s223_s15 = sshll.u32 %s216_s14, 4  ;;  %p822_p2 = pneg %p803_p13  ;;  %s224_s15 = int_to_ptr.vmem [resolvable:$true] %s223_s15 }
  0x20   : > { %s812_s13 = scalar_lea.hbm %s978_s1, %s797_s7  ;;  %s558_s11 = scalar_lea.hbm %s978_s1, 256 }
  0x21   : > { %s553_s17 = scalar_lea.hbm %s812_s13, 128  ;;  %p559_p5 = scmp.lt.s32.totalorder %s812_s13, %s978_s1 }
  0x22   : > { %p554_p1 = scmp.ne.s32.totalorder %s812_s13, %s553_s17  ;;  %p560_p7 = scmp.lt.s32.totalorder %s558_s11, %s553_s17 }
  0x24   : > { %p556_p3 = pnand %p822_p2, %p554_p1  ;;  %p561_p8 = por %p560_p7, %p559_p5 }
  0x26   : > { %p557_p4 = pneg %p556_p3 }
  0x28   : > { %p562_p10 = pnand %p561_p8, %p557_p4 }
  0x2a   : > { %565 = shalt.err (!%p562_p10)
}
  0x2b   : > { %s566_s10 = scalar_lea.vmem %s224_s15, 128  ;;  %s707_s6 = smov [#allocation5]  }
  0x2c   : > { %p567_p9 = scmp.ne.s32.totalorder %s224_s15, %s566_s10  ;;  %s571_s27 = sshll.u32 %s707_s6, 4  ;;  %s572_s27 = int_to_ptr.vmem [resolvable:$false] %s571_s27 }
  0x2d   : > { %s573_s24 = scalar_lea.vmem %s572_s27, 256  ;;  %p574_p1 = scmp.lt.s32.totalorder %s224_s15, %s572_s27 }
  0x2e   : > { %p569_p0 = pnand %p567_p9, %p822_p2  ;;  %p575_p3 = scmp.lt.s32.totalorder %s573_s24, %s566_s10 }
  0x30   : > { %p570_p12 = pneg %p569_p0  ;;  %p576_p11 = por %p575_p3, %p574_p1 }
  0x32   : > { %p577_p6 = pnand %p576_p11, %p570_p12 }
  0x34   : > { %580 = shalt.err (!%p577_p6)
}
  0x35   : > { %509 = dma.hbm_to_vmem [thread:$0]  (!%p803_p13), %s812_s13, 128, %s224_s15, %s816_s16  }
  0x36   : > { %p246_p9 = scmp.lt.s32.totalorder %s705_s21, 3  ;;  %s980_s0 = sld [smem:[#allocation15_spill]] }
  0x37   : > { %p981_p0 = scmp.ge.s32.totalorder %s705_s21, 1  ;;  %s198_s25 = scalar_lea.vmem [#allocation2], %s801_s8 }
  0x38   : > { %s205_s26 = sshll.u32 %s198_s25, 4  ;;  %s983_s11 = sand.u32 1, %s701_s20   ;;  %s206_s26 = int_to_ptr.vmem [resolvable:$true] %s205_s26 }
  0x39   : > { %p850_p6 = pnand %p981_p0, %p246_p9  ;;  %s195_s12 = scalar_lea.sflag [#allocation3], %s983_s11 }
  0x3b   : > { %s982_s24 = scalar_select %p850_p6, 1, 0 }
  0x3c   : > { %s846_s27 = scalar_lea.hbm %s980_s0, %s797_s7  ;;  %s586_s10 = scalar_lea.hbm %s980_s0, 256 }
  0x3d   : > { %s581_s13 = scalar_lea.hbm %s846_s27, 128  ;;  %p587_p5 = scmp.lt.s32.totalorder %s846_s27, %s980_s0 }
  0x3e   : > { %p582_p11 = scmp.ne.s32.totalorder %s846_s27, %s581_s13  ;;  %p588_p7 = scmp.lt.s32.totalorder %s586_s10, %s581_s13 }
  0x40   : > { %p584_p12 = pnand %p582_p11, %p822_p2  ;;  %p589_p8 = por %p588_p7, %p587_p5 }
  0x42   : > { %p585_p4 = pneg %p584_p12 }
  0x44   : > { %p590_p10 = pnand %p589_p8, %p585_p4 }
  0x46   : > { %593 = shalt.err (!%p590_p10)
}
  0x47   : > { %s594_s25 = scalar_lea.vmem %s206_s26, 128  ;;  %s708_s11 = smov [#allocation2]  }
  0x48   : > { %p595_p1 = scmp.ne.s32.totalorder %s206_s26, %s594_s25  ;;  %s599_s1 = sshll.u32 %s708_s11, 4  ;;  %s600_s1 = int_to_ptr.vmem [resolvable:$false] %s599_s1 }
  0x49   : > { %s601_s20 = scalar_lea.vmem %s600_s1, 256  ;;  %p602_p0 = scmp.lt.s32.totalorder %s206_s26, %s600_s1 }
  0x4a   : > { %p597_p3 = pnand %p595_p1, %p822_p2  ;;  %p603_p11 = scmp.lt.s32.totalorder %s601_s20, %s594_s25 }
  0x4c   : > { %p598_p9 = pneg %p597_p3  ;;  %p604_p12 = por %p603_p11, %p602_p0 }
  0x4e   : > { %p605_p6 = pnand %p604_p12, %p598_p9 }
  0x50   : > { %608 = shalt.err (!%p605_p6)
}
  0x51   : > { %506 = dma.hbm_to_vmem [thread:$0]  (!%p803_p13), %s846_s27, 128, %s206_s26, %s195_s12  }
  0x52   : > { %s239_s14 = scalar_lea.hbm %s959_s2, %s797_s7  ;;  %s234_s10 = scalar_lea.vmem [#allocation7], %s801_s8 }
  0x53   : > { %s241_s6 = sshll.u32 %s234_s10, 4  ;;  %s609_s17 = scalar_lea.hbm %s239_s14, 128  ;;  %s242_s6 = int_to_ptr.vmem [resolvable:$true] %s241_s6 }
  0x54   : > { %p610_p4 = scmp.ne.s32.totalorder %s239_s14, %s609_s17  ;;  %s614_s25 = scalar_lea.hbm %s959_s2, 256 }
  0x55   : > { %p615_p6 = scmp.lt.s32.totalorder %s239_s14, %s959_s2  ;;  %p616_p8 = scmp.lt.s32.totalorder %s614_s25, %s609_s17 }
  0x56   : > { %p612_p5 = pnand %p610_p4, %p822_p2 }
  0x57   : > { %p617_p10 = por %p616_p8, %p615_p6 }
  0x58   : > { %p613_p7 = pneg %p612_p5 }
  0x5a   : > { %p618_p1 = pnand %p617_p10, %p613_p7 }
  0x5c   : > { %621 = shalt.err (!%p618_p1)
}
  0x5d   : > { %s622_s7 = scalar_lea.vmem %s242_s6, 128  ;;  %s709_s8 = smov [#allocation7]  }
  0x5e   : > { %p623_p3 = scmp.ne.s32.totalorder %s242_s6, %s622_s7  ;;  %s627_s27 = sshll.u32 %s709_s8, 4  ;;  %s628_s27 = int_to_ptr.vmem [resolvable:$false] %s627_s27 }
  0x5f   : > { %s629_s26 = scalar_lea.vmem %s628_s27, 256  ;;  %p630_p11 = scmp.lt.s32.totalorder %s242_s6, %s628_s27 }
  0x60   : > { %p625_p9 = pnand %p623_p3, %p822_p2  ;;  %p631_p12 = scmp.lt.s32.totalorder %s629_s26, %s622_s7 }
  0x62   : > { %p626_p0 = pneg %p625_p9  ;;  %p632_p4 = por %p631_p12, %p630_p11 }
  0x64   : > { %p633_p5 = pnand %p632_p4, %p626_p0 }
  0x66   : > { %636 = shalt.err (!%p633_p5)
}
  0x67   : > { %512 = dma.hbm_to_vmem [thread:$0]  (!%p803_p13), %s239_s14, 128, %s242_s6, %s816_s16  }
  0x68   : > { %p984_p7 = scmp.ne.s32.totalorder %s982_s24, 0 }
  0x69   : > { %s894_s0 = sand.u32 (!%p984_p7), 1, %s697_s19   ;;  %p985_p2 = scmp.ne.s32.totalorder (!%p984_p7), %s974_s28, 0 }
  0x6a   : > { %250 = sbr.rel (%p984_p7) target bundleno = 441 (0x1b9), region = 40  ;;  %s897_s23 = sshll.u32 (!%p984_p7), %s894_s0, 3 }
  0x6b   : > { %s253_s12 = scalar_lea.sflag (!%p984_p7), [#allocation3], %s894_s0  ;;  %s256_s13 = scalar_lea.vmem (!%p984_p7), [#allocation2], %s897_s23 }
  0x6f   : > { %680 = dma.done.wait (%p985_p2), %s253_s12, 128  }
  0x70   : > { %682 = vsyncadd (%p985_p2), %s253_s12, 4294967168  ;;  %s261_s9 = sand.u32 1, %s762_s22   ;;  %s265_s24 = scalar_lea.vmem [#allocation5], %s897_s23 }
  0x71   : > { %s262_s16 = scalar_lea.sflag [#allocation6], %s261_s9 }
  0x72   : > { %684 = dma.done.wait (%p985_p2), %s262_s16, 256  }
  0x73   : > { %686 = vsyncadd (%p985_p2), %s262_s16, 4294967040  ;;  %v311_v0 = vld [vmem:[%s256_s13] sm:$0xff]  ;;  %v312_v1 = vld [vmem:[%s265_s24] sm:$0xff]  ;;  %s274_s15 = scalar_lea.vmem [#allocation7], %s897_s23  ;;  %vm318_vm0 = vcmask 261120   ;;  %s492_s17 = sshll.u32 %s762_s22, 7 }
  0x74   : > { %v314_v2 = vld [vmem:[%s274_s15] sm:$0xff]  ;;  %v313_v3 = vadd.f32 %v312_v1, %v311_v0  ;;  %s310_s1 = scalar_lea.vmem [#allocation8], %s897_s23  ;;  %s360_s7 = scalar_lea.hbm %s962_s5, %s492_s17 }
  0x75   : > { %v489_v15 = vld [vmem:[%s960_s3] ss:$0 sm:$0xff]  ;;  %s362_s20 = sshll.u32 %s310_s1, 4  ;;  %s349_s8 = scalar_lea.sflag [#allocation4], %s894_s0  ;;  %s363_s20 = int_to_ptr.vmem [resolvable:$true] %s362_s20 }
  0x76   : > { %v315_v4 = vadd.f32 %v314_v2, %v313_v3  ;;  %v490_v17 = vld [vmem:[%s961_s4] ss:$0 sm:$0xff]  ;;  %s637_s27 = scalar_lea.vmem %s363_s20, 128  ;;  %p986_p6 = scmp.ne.s32.totalorder %s975_s29, 0 }
  0x77   : > { %p638_p13 = scmp.ne.s32.totalorder %s363_s20, %s637_s27  ;;  %s710_s26 = smov [#allocation8]  }
  0x78   : > { %v319_v5 = vsel %vm318_vm0, %v315_v4, 0.0  ;;  %s641_s12 = sshll.u32 %s710_s26, 4  ;;  %s642_s12 = int_to_ptr.vmem [resolvable:$false] %s641_s12 }
  0x79   : > { %320 = vadd.xlane.f32.xlu0 %v319_v5  ;;  %p639_p8 = pnand %p638_p13, %p986_p6  ;;  %s643_s22 = scalar_lea.vmem %s642_s12, 256 }
  0x7a   : > { %p644_p1 = scmp.lt.s32.totalorder %s363_s20, %s642_s12  ;;  %p645_p3 = scmp.lt.s32.totalorder %s643_s22, %s637_s27 }
  0x7b   : > { %p640_p10 = pneg %p639_p8 }
  0x7c   : > { %p646_p9 = por %p645_p3, %p644_p1 }
  0x7e   : > { %p647_p0 = pnand %p646_p9, %p640_p10 }
 0x102   : > { %v321_v6 = vpop.xlane.xlu0 %320 }
 0x103   : > { %v323_v7 = vmul.f32 0.03125, %v321_v6 }
 0x105   : > { %v324_v8 = vsub.f32 %v315_v4, %v323_v7 }
 0x107   : > { %v325_v9 = vmul.f32 %v324_v8, %v324_v8 }
 0x109   : > { %v326_v10 = vsel %vm318_vm0, %v325_v9, 0.0 }
 0x10a   : > { %327 = vadd.xlane.f32.xlu0 %v326_v10 }
 0x193   : > { %v328_v11 = vpop.xlane.xlu0 %327 }
 0x194   : > { %v329_v12 = vmul.f32 0.03125, %v328_v11 }
 0x196   : > { %v330_v13 = vadd.f32 1e-12, %v329_v12 }
 0x198   : > { %551 = vrsqrt.f32 %v330_v13 }
 0x1a5   : > { %v552_v14 = vpop.eup %551 }
 0x1a6   : > { %v332_v16 = vmul.f32 %v552_v14, %v324_v8 }
 0x1a8   : > { %v339_v18 = vmul.f32 %v489_v15, %v332_v16 }
 0x1aa   : > { %v346_v19 = vadd.f32 %v490_v17, %v339_v18 }
 0x1ac   : > { %347 = vst.msk [vmem:[%s310_s1] sm:$0xff] %vm318_vm0, %v346_v19 }
 0x1ad   : > { %650 = shalt.err (!%p647_p0)
}
 0x1ae   : > { %s651_s23 = scalar_lea.hbm %s360_s7, 128  ;;  %s655_s9 = scalar_lea.hbm %s962_s5, 256 }
 0x1af   : > { %p652_p11 = scmp.ne.s32.totalorder %s360_s7, %s651_s23  ;;  %p656_p5 = scmp.lt.s32.totalorder %s360_s7, %s962_s5 }
 0x1b0   : > { %p657_p7 = scmp.lt.s32.totalorder %s655_s9, %s651_s23 }
 0x1b1   : > { %p653_p12 = pnand %p652_p11, %p986_p6 }
 0x1b2   : > { %p658_p2 = por %p657_p7, %p656_p5 }
 0x1b3   : > { %p654_p4 = pneg %p653_p12 }
 0x1b5   : > { %p659_p13 = pnand %p658_p2, %p654_p4 }
 0x1b7   : > { %662 = shalt.err (!%p659_p13)
}
 0x1b8   : > { %501 = dma.vmem_to_hbm [thread:$0]  (%p986_p6), %s363_s20, 128, %s360_s7, %s349_s8  }
 0x1b9 PF: > { %s374_s15 = sand.u32 1, %s693_s18   ;;  %p987_p8 = scmp.ne.s32.totalorder %s976_s30, 0 }
 0x1ba   : > { %p988_p10 = scmp.ge.s32.totalorder %s705_s21, 2  ;;  %s375_s28 = scalar_lea.sflag [#allocation4], %s374_s15 }
 0x1bc   : > { %p514_p1 = pnand %p988_p10, %p987_p8 }
 0x1be   : > { %p515_p3 = pneg %p514_p1 }
 0x1c0   : > { %688 = dma.done.wait (%p515_p3), %s375_s28, 128  }
 0x1c1   : > { %690 = vsyncadd (%p515_p3), %s375_s28, 4294967168  ;;  %s989_s21 = sld [smem:[#allocation13_spill]]  ;;  %s992_s18 = smov %s697_s19 }
 0x1c2   : > { %s990_s14 = sld [smem:[#allocation12_spill]] }
 0x1c3   : > { %s991_s20 = sld [smem:[#allocation14_spill]] }
 0x1c7   : > { %p21_p9 = scmp.ge.s32.totalorder %s989_s21, 4  }
 0x1c8   : > { %s993_s19 = smov %s990_s14 }
 0x1c9   :  { %23 = sbr.rel (!%p21_p9) target bundleno = 10 (0xa), region = 109 }
 0x1ce   :  { %380 = vsyncpa [#allocation3], 1 }
 0x1cf   :  { %382 = vsyncpa [#allocation3 + $0x1], 1 }
 0x1d0   :  { %383 = vsyncpa [#allocation6], 1 }
 0x1d1   :  { %385 = vsyncpa [#allocation6 + $0x1], 1 }
 0x1d2   :  { %386 = vsyncpa [#allocation4], 1 }
 0x1d3   :  { %388 = vsyncpa [#allocation4 + $0x1], 1 }

</bundles_post_ra>
